<compile_context>
chip_gen: v7x
topology: tpu7x:2x2x1
jax: 0.10.0
libtpu: 0.0.40
codegen_flags: <defaults>
</compile_context>

<pallas_src>
import functools

import jax
import jax.numpy as jnp
from jax.experimental import pallas as pl
from jax.experimental.pallas import tpu as pltpu

LANE = 128
SUBLANE = 8


def _round_up(v, m):
    return (v + m - 1) // m * m


def _mlp_kernel(x_ref, w1_ref, b1_ref, w2_ref, b2_ref, w3_ref, b3_ref,
                w4_ref, b4_ref, o_ref):
    # Weights arrive in the compute dtype (bf16 by default).  x arrives as f32
    # and is cast here (folds the wrapper-side cast pass into the kernel).
    # All matmuls accumulate in f32 on the MXU; bias-add + ReLU run in f32 and
    # the hidden activations are re-cast to the compute dtype between layers to
    # halve vreg/VMEM pressure of the (tile, 512) intermediate.
    cdt = w1_ref.dtype

    h = jnp.dot(x_ref[...].astype(cdt), w1_ref[...],
                preferred_element_type=jnp.float32)
    h = jnp.maximum(h + b1_ref[...], 0.0).astype(cdt)

    h = jnp.dot(h, w2_ref[...], preferred_element_type=jnp.float32)
    h = jnp.maximum(h + b2_ref[...], 0.0).astype(cdt)

    h = jnp.dot(h, w3_ref[...], preferred_element_type=jnp.float32)
    h = jnp.maximum(h + b3_ref[...], 0.0).astype(cdt)

    out = jnp.dot(h, w4_ref[...], preferred_element_type=jnp.float32) + b4_ref[...]
    o_ref[...] = out.astype(o_ref.dtype)


def _choose_tiling(batch, batch_tile):
    """Pick (bt, B_pad, n_tiles): bt multiple of 8, grid even when > 1."""
    n_tiles = pl.cdiv(batch, batch_tile)
    # Megacore (v7x has 2 TCs): once the batch is big enough, make sure the
    # grid has at least 2 steps and an even length so both cores get equal work.
    if n_tiles == 1 and batch > 1024:
        n_tiles = 2
    if n_tiles > 1 and n_tiles % 2 == 1:
        n_tiles += 1
    bt = _round_up(pl.cdiv(batch, n_tiles), SUBLANE)
    b_pad = n_tiles * bt
    return bt, b_pad, n_tiles


@functools.partial(jax.jit, static_argnames=("batch_tile", "compute_dtype"))
def linear_model_forward(x, params, *, batch_tile=2048, compute_dtype=jnp.bfloat16):
    """Run the LinearModel forward pass with a fused Pallas TPU kernel.

    x:       (B, in_channels) float32
    params:  dict with w1..w4 of shape (in, out) and b1..b4 of shape (1, out)
    returns: (B, out_size) float32
    """
    B, in_features = x.shape
    out_size = params["w4"].shape[1]

    bt, B_pad, n_tiles = _choose_tiling(B, batch_tile)

    # Only materialize a padded copy of x when the batch doesn't divide the
    # tile; the f32->compute_dtype cast happens inside the kernel either way.
    if B_pad != B:
        x_in = jnp.pad(x, ((0, B_pad - B), (0, 0)))
    else:
        x_in = x

    # Lane-dense final layer: pad out_size (e.g. 10) up to a multiple of 128 so
    # the output store is an unmasked vst and the last matmul is full MXU width.
    # Padded columns are zero-filled weights / zero bias, sliced off below.
    n_out = _round_up(out_size, LANE)
    w4 = jnp.zeros((params["w4"].shape[0], n_out), compute_dtype)
    w4 = w4.at[:, :out_size].set(params["w4"].astype(compute_dtype))
    b4 = jnp.zeros((1, n_out), jnp.float32)
    b4 = b4.at[:, :out_size].set(params["b4"].astype(jnp.float32))

    w1 = params["w1"].astype(compute_dtype)
    w2 = params["w2"].astype(compute_dtype)
    w3 = params["w3"].astype(compute_dtype)
    b1 = params["b1"].astype(jnp.float32)
    b2 = params["b2"].astype(jnp.float32)
    b3 = params["b3"].astype(jnp.float32)

    grid = (n_tiles,)

    def x_map(i):
        return (i, 0)

    def rep_map(i):  # weights / biases: same (resident) block every grid step
        return (0, 0)

    # NOTE: the resident weight/bias blocks are double-buffered by default
    # (~400 KiB of dead VMEM).  Left as-is for lowering robustness; total VMEM
    # stays far below the limit even at bt=2048.
    in_specs = [
        pl.BlockSpec((bt, in_features), x_map),
        pl.BlockSpec(w1.shape, rep_map),
        pl.BlockSpec(b1.shape, rep_map),
        pl.BlockSpec(w2.shape, rep_map),
        pl.BlockSpec(b2.shape, rep_map),
        pl.BlockSpec(w3.shape, rep_map),
        pl.BlockSpec(b3.shape, rep_map),
        pl.BlockSpec(w4.shape, rep_map),
        pl.BlockSpec(b4.shape, rep_map),
    ]
    out_specs = pl.BlockSpec((bt, n_out), x_map)

    # VMEM budget scales with tile size; 48 MiB keeps headroom under v7x's
    # 64 MiB physical VMEM and is trivially fine on v5e/v6e (128 MiB).
    vmem_limit = (48 if bt > 1024 else 32) * 1024 * 1024

    out_pad = pl.pallas_call(
        _mlp_kernel,
        grid=grid,
        in_specs=in_specs,
        out_specs=out_specs,
        out_shape=jax.ShapeDtypeStruct((B_pad, n_out), jnp.float32),
        compiler_params=pltpu.CompilerParams(
            # Batch axis is independent -> megacore split on v7x.
            dimension_semantics=("parallel",),
            vmem_limit_bytes=vmem_limit,
        ),
    )(x_in, w1, b1, w2, b2, w3, b3, w4, b4)

    # TODO(synk): on v5e, storing a bf16 output slab (or fusing this slice into
    # the consumer) would cut the dominant output-side HBM traffic.
    return out_pad[:B, :out_size]


def init_params(key, in_channels, out_size):
    """nn.Linear-style init: U(-1/sqrt(fan_in), 1/sqrt(fan_in)).

    PyTorch stores Linear weight as (out, in); we store the transpose (in, out)
    so the kernel computes x @ W directly.
    """
    dims = [(in_channels, 512), (512, 256), (256, 128), (128, out_size)]
    params = {}
    for idx, (fan_in, fan_out) in enumerate(dims, start=1):
        key, kw, kb = jax.random.split(key, 3)
        bound = 1.0 / (fan_in ** 0.5)
        params[f"w{idx}"] = jax.random.uniform(
            kw, (fan_in, fan_out), jnp.float32, minval=-bound, maxval=bound)
        params[f"b{idx}"] = jax.random.uniform(
            kb, (1, fan_out), jnp.float32, minval=-bound, maxval=bound)
    return params


def reference_forward_f32(x, params):
    h = jnp.maximum(x @ params["w1"] + params["b1"], 0.0)
    h = jnp.maximum(h @ params["w2"] + params["b2"], 0.0)
    h = jnp.maximum(h @ params["w3"] + params["b3"], 0.0)
    return h @ params["w4"] + params["b4"]


def reference_forward_bf16(x, params):
    # Mirrors the kernel's numerics: bf16 matmul inputs, f32 accumulation,
    # f32 bias/ReLU, bf16 hidden activations between layers.
    bf = jnp.bfloat16

    def lin(h, w, b):
        return jnp.dot(h.astype(bf), w.astype(bf),
                       preferred_element_type=jnp.float32) + b

    h = jnp.maximum(lin(x, params["w1"], params["b1"]), 0.0)
    h = jnp.maximum(lin(h, params["w2"], params["b2"]), 0.0)
    h = jnp.maximum(lin(h, params["w3"], params["b3"]), 0.0)
    return lin(h, params["w4"], params["b4"])


if __name__ == "__main__":
    key = jax.random.PRNGKey(0)
    batch, in_channels, out_size = 8, 32, 10

    k_x, k_p = jax.random.split(key)
    x = jax.random.normal(k_x, (batch, in_channels), jnp.float32)
    params = init_params(k_p, in_channels, out_size)

    out = linear_model_forward(x, params)
    out = jax.block_until_ready(out)
    assert out.shape == (batch, out_size)

    # Tight check vs. a reference with the same bf16-operand / f32-accum math.
    ref_bf16 = reference_forward_bf16(x, params)
    assert jnp.allclose(out, ref_bf16, atol=2e-3, rtol=2e-3), "mismatch vs bf16 reference"

    # Sanity check vs. the full-f32 reference (loose tolerance for bf16 operands).
    ref_f32 = reference_forward_f32(x, params)
    assert jnp.allclose(out, ref_f32, atol=1e-1, rtol=1e-1), "mismatch vs f32 reference"

    # Strict-f32 path (same kernel, compute_dtype=f32) for parity with PyTorch.
    out_f32 = jax.block_until_ready(
        linear_model_forward(x, params, compute_dtype=jnp.float32))
    assert jnp.allclose(out_f32, ref_f32, atol=1e-4, rtol=1e-4), "f32-path mismatch"

    print("KERNEL_OK")
</pallas_src>

<mosaic_0001>
module attributes {stable_mosaic.version = 11 : i64} {
  func.func @_mlp_kernel(%arg0: i32, %arg1: memref<8x32xf32, #tpu.memory_space<vmem>>, %arg2: memref<32x512xbf16, #tpu.memory_space<vmem>>, %arg3: memref<1x512xf32, #tpu.memory_space<vmem>>, %arg4: memref<512x256xbf16, #tpu.memory_space<vmem>>, %arg5: memref<1x256xf32, #tpu.memory_space<vmem>>, %arg6: memref<256x128xbf16, #tpu.memory_space<vmem>>, %arg7: memref<1x128xf32, #tpu.memory_space<vmem>>, %arg8: memref<128x128xbf16, #tpu.memory_space<vmem>>, %arg9: memref<1x128xf32, #tpu.memory_space<vmem>>, %arg10: memref<8x128xf32, #tpu.memory_space<vmem>>) attributes {dimension_semantics = [#tpu.dimension_semantics<parallel>], iteration_bounds = array<i64: 1>, scalar_prefetch = 0 : i64, scratch_operands = 0 : i64, tpu.core_type = #tpu.core_type<tc>, window_params = [{transform_indices = @transform_0, window_bounds = array<i64: 8, 32>}, {pipeline_mode = #tpu.pipeline_mode<synchronous>, transform_indices = @transform_1, window_bounds = array<i64: 32, 512>}, {pipeline_mode = #tpu.pipeline_mode<synchronous>, transform_indices = @transform_2, window_bounds = array<i64: 1, 512>}, {pipeline_mode = #tpu.pipeline_mode<synchronous>, transform_indices = @transform_3, window_bounds = array<i64: 512, 256>}, {pipeline_mode = #tpu.pipeline_mode<synchronous>, transform_indices = @transform_4, window_bounds = array<i64: 1, 256>}, {pipeline_mode = #tpu.pipeline_mode<synchronous>, transform_indices = @transform_5, window_bounds = array<i64: 256, 128>}, {pipeline_mode = #tpu.pipeline_mode<synchronous>, transform_indices = @transform_6, window_bounds = array<i64: 1, 128>}, {pipeline_mode = #tpu.pipeline_mode<synchronous>, transform_indices = @transform_7, window_bounds = array<i64: 128, 128>}, {pipeline_mode = #tpu.pipeline_mode<synchronous>, transform_indices = @transform_8, window_bounds = array<i64: 1, 128>}, {transform_indices = @transform_9, window_bounds = array<i64: 8, 128>}]} {
    %c0 = arith.constant 0 : index
    %c0_0 = arith.constant 0 : index
    %0 = vector.load %arg1[%c0, %c0_0] : memref<8x32xf32, #tpu.memory_space<vmem>>, vector<8x32xf32>
    %1 = arith.truncf %0 : vector<8x32xf32> to vector<8x32xbf16>
    %c0_1 = arith.constant 0 : index
    %c0_2 = arith.constant 0 : index
    %2 = vector.load %arg2[%c0_1, %c0_2] : memref<32x512xbf16, #tpu.memory_space<vmem>>, vector<32x512xbf16>
    %cst = arith.constant dense<0.000000e+00> : vector<8x512xf32>
    %3 = tpu.matmul %1, %2, %cst {dimension_numbers = #tpu.dot_dimension_numbers<[1], [0], [0], [1], [0, 0, 1, 1], [], []>} : vector<8x32xbf16>, vector<32x512xbf16>, vector<8x512xf32> -> vector<8x512xf32>
    %c0_3 = arith.constant 0 : index
    %c0_4 = arith.constant 0 : index
    %4 = vector.load %arg3[%c0_3, %c0_4] : memref<1x512xf32, #tpu.memory_space<vmem>>, vector<1x512xf32>
    %5 = vector.broadcast %4 : vector<1x512xf32> to vector<8x512xf32>
    %6 = arith.addf %3, %5 : vector<8x512xf32>
    %cst_5 = arith.constant 0.000000e+00 : f32
    %7 = vector.broadcast %cst_5 : f32 to vector<8x512xf32>
    %8 = arith.maximumf %6, %7 : vector<8x512xf32>
    %9 = arith.truncf %8 : vector<8x512xf32> to vector<8x512xbf16>
    %c0_6 = arith.constant 0 : index
    %c0_7 = arith.constant 0 : index
    %10 = vector.load %arg4[%c0_6, %c0_7] : memref<512x256xbf16, #tpu.memory_space<vmem>>, vector<512x256xbf16>
    %cst_8 = arith.constant dense<0.000000e+00> : vector<8x256xf32>
    %11 = tpu.matmul %9, %10, %cst_8 {dimension_numbers = #tpu.dot_dimension_numbers<[1], [0], [0], [1], [0, 0, 1, 1], [], []>} : vector<8x512xbf16>, vector<512x256xbf16>, vector<8x256xf32> -> vector<8x256xf32>
    %c0_9 = arith.constant 0 : index
    %c0_10 = arith.constant 0 : index
    %12 = vector.load %arg5[%c0_9, %c0_10] : memref<1x256xf32, #tpu.memory_space<vmem>>, vector<1x256xf32>
    %13 = vector.broadcast %12 : vector<1x256xf32> to vector<8x256xf32>
    %14 = arith.addf %11, %13 : vector<8x256xf32>
    %cst_11 = arith.constant 0.000000e+00 : f32
    %15 = vector.broadcast %cst_11 : f32 to vector<8x256xf32>
    %16 = arith.maximumf %14, %15 : vector<8x256xf32>
    %17 = arith.truncf %16 : vector<8x256xf32> to vector<8x256xbf16>
    %c0_12 = arith.constant 0 : index
    %c0_13 = arith.constant 0 : index
    %18 = vector.load %arg6[%c0_12, %c0_13] : memref<256x128xbf16, #tpu.memory_space<vmem>>, vector<256x128xbf16>
    %cst_14 = arith.constant dense<0.000000e+00> : vector<8x128xf32>
    %19 = tpu.matmul %17, %18, %cst_14 {dimension_numbers = #tpu.dot_dimension_numbers<[1], [0], [0], [1], [0, 0, 1, 1], [], []>} : vector<8x256xbf16>, vector<256x128xbf16>, vector<8x128xf32> -> vector<8x128xf32>
    %c0_15 = arith.constant 0 : index
    %c0_16 = arith.constant 0 : index
    %20 = vector.load %arg7[%c0_15, %c0_16] : memref<1x128xf32, #tpu.memory_space<vmem>>, vector<1x128xf32>
    %21 = vector.broadcast %20 : vector<1x128xf32> to vector<8x128xf32>
    %22 = arith.addf %19, %21 : vector<8x128xf32>
    %cst_17 = arith.constant 0.000000e+00 : f32
    %23 = vector.broadcast %cst_17 : f32 to vector<8x128xf32>
    %24 = arith.maximumf %22, %23 : vector<8x128xf32>
    %25 = arith.truncf %24 : vector<8x128xf32> to vector<8x128xbf16>
    %c0_18 = arith.constant 0 : index
    %c0_19 = arith.constant 0 : index
    %26 = vector.load %arg8[%c0_18, %c0_19] : memref<128x128xbf16, #tpu.memory_space<vmem>>, vector<128x128xbf16>
    %cst_20 = arith.constant dense<0.000000e+00> : vector<8x128xf32>
    %27 = tpu.matmul %25, %26, %cst_20 {dimension_numbers = #tpu.dot_dimension_numbers<[1], [0], [0], [1], [0, 0, 1, 1], [], []>} : vector<8x128xbf16>, vector<128x128xbf16>, vector<8x128xf32> -> vector<8x128xf32>
    %c0_21 = arith.constant 0 : index
    %c0_22 = arith.constant 0 : index
    %28 = vector.load %arg9[%c0_21, %c0_22] : memref<1x128xf32, #tpu.memory_space<vmem>>, vector<1x128xf32>
    %29 = vector.broadcast %28 : vector<1x128xf32> to vector<8x128xf32>
    %30 = arith.addf %27, %29 : vector<8x128xf32>
    %c0_23 = arith.constant 0 : index
    %c0_24 = arith.constant 0 : index
    %31 = vector.load %arg10[%c0_23, %c0_24] : memref<8x128xf32, #tpu.memory_space<vmem>>, vector<8x128xf32>
    tpu.vector_store %arg10[%c0_23, %c0_24], %30 {strides = array<i32>} : memref<8x128xf32, #tpu.memory_space<vmem>>, vector<8x128xf32>,
    return
  }
  func.func @transform_0(%arg0: i32) -> (i32, i32) {
    %c0_i32 = arith.constant 0 : i32
    %c0_i32_0 = arith.constant 0 : i32
    return %arg0, %c0_i32 : i32, i32
  }
  func.func @transform_1(%arg0: i32) -> (i32, i32) {
    %c0_i32 = arith.constant 0 : i32
    %c0_i32_0 = arith.constant 0 : i32
    %c0_i32_1 = arith.constant 0 : i32
    return %c0_i32, %c0_i32_0 : i32, i32
  }
  func.func @transform_2(%arg0: i32) -> (i32, i32) {
    %c0_i32 = arith.constant 0 : i32
    %c0_i32_0 = arith.constant 0 : i32
    %c0_i32_1 = arith.constant 0 : i32
    return %c0_i32, %c0_i32_0 : i32, i32
  }
  func.func @transform_3(%arg0: i32) -> (i32, i32) {
    %c0_i32 = arith.constant 0 : i32
    %c0_i32_0 = arith.constant 0 : i32
    %c0_i32_1 = arith.constant 0 : i32
    return %c0_i32, %c0_i32_0 : i32, i32
  }
  func.func @transform_4(%arg0: i32) -> (i32, i32) {
    %c0_i32 = arith.constant 0 : i32
    %c0_i32_0 = arith.constant 0 : i32
    %c0_i32_1 = arith.constant 0 : i32
    return %c0_i32, %c0_i32_0 : i32, i32
  }
  func.func @transform_5(%arg0: i32) -> (i32, i32) {
    %c0_i32 = arith.constant 0 : i32
    %c0_i32_0 = arith.constant 0 : i32
    %c0_i32_1 = arith.constant 0 : i32
    return %c0_i32, %c0_i32_0 : i32, i32
  }
  func.func @transform_6(%arg0: i32) -> (i32, i32) {
    %c0_i32 = arith.constant 0 : i32
    %c0_i32_0 = arith.constant 0 : i32
    %c0_i32_1 = arith.constant 0 : i32
    return %c0_i32, %c0_i32_0 : i32, i32
  }
  func.func @transform_7(%arg0: i32) -> (i32, i32) {
    %c0_i32 = arith.constant 0 : i32
    %c0_i32_0 = arith.constant 0 : i32
    %c0_i32_1 = arith.constant 0 : i32
    return %c0_i32, %c0_i32_0 : i32, i32
  }
  func.func @transform_8(%arg0: i32) -> (i32, i32) {
    %c0_i32 = arith.constant 0 : i32
    %c0_i32_0 = arith.constant 0 : i32
    %c0_i32_1 = arith.constant 0 : i32
    return %c0_i32, %c0_i32_0 : i32, i32
  }
  func.func @transform_9(%arg0: i32) -> (i32, i32) {
    %c0_i32 = arith.constant 0 : i32
    %c0_i32_0 = arith.constant 0 : i32
    return %arg0, %c0_i32 : i32, i32
  }
}

</mosaic_0001>

<bundles_post_ra>
// kernel: linear_model_forward.1
= control target key start
LH: loop header
LB: loop body
LE: loop exit
PB: predicated region body
PF: predicated region fallthrough
CT: control target
= control target key end

     0   :  { %v1302_v2 = vmov 0   ;;  %vm106_vm0 = vcmask 261120   ;;  %s1696_s0 = inlined_call_operand.vmem [shape: f32[8,32], index: 0, kind: input, shape index: {}]   ;;  %s1697_s1 = inlined_call_operand.vmem [shape: bf16[32,512], index: 1, kind: input, shape index: {}]   ;;  %s1698_s2 = inlined_call_operand.vmem [shape: f32[1,512], index: 2, kind: input, shape index: {}]   ;;  %s1699_s3 = inlined_call_operand.vmem [shape: bf16[512,256], index: 3, kind: input, shape index: {}]   ;;  %s1700_s4 = inlined_call_operand.vmem [shape: f32[1,256], index: 4, kind: input, shape index: {}]   ;;  %s1701_s5 = inlined_call_operand.vmem [shape: bf16[256,128], index: 5, kind: input, shape index: {}]   ;;  %s1702_s6 = inlined_call_operand.vmem [shape: f32[1,128], index: 6, kind: input, shape index: {}]   ;;  %s1703_s7 = inlined_call_operand.vmem [shape: bf16[128,128], index: 7, kind: input, shape index: {}]   ;;  %s1704_s8 = inlined_call_operand.vmem [shape: f32[1,128], index: 8, kind: input, shape index: {}]   ;;  %s1705_s9 = inlined_call_operand.hbm [shape: f32[8,128], index: 9, kind: output, shape index: {}]  }
   0x1   :  { %v1146_v0 = vld [vmem:[%s1697_s1 + $0x4] ss:$16 sps:$4 sm:$0xff]   ;;  %v1148_v1 = vld [vmem:[%s1697_s1] ss:$16 sps:$4 sm:$0xff]   ;;  %142 = vmatprep.mubr.bf16.mxu1 %v1302_v2  ;;  %v1154_v6 = vld [vmem:[%s1697_s1 + $0xc] ss:$16 sps:$4 sm:$0xff]  }
   0x2   :  { %110 = vmatprep.subr.bf16.mxu1 %v1146_v0  ;;  %v1149_v3 = vld [vmem:[%s1697_s1 + $0x24] ss:$16 sps:$4 sm:$0xff]   ;;  %v1151_v4 = vld [vmem:[%s1697_s1 + $0x20] ss:$16 sps:$4 sm:$0xff]   ;;  %v1152_v7 = vld [vmem:[%s1697_s1 + $0x8] ss:$16 sps:$4 sm:$0xff]  }
   0x3   :  { %111 = vmatpush1.bf16.msra.mxu1 %v1148_v1  ;;  %v34_v5 = vld [vmem:[%s1696_s0] sm:$0xff]  ;;  %v1161_v11 = vld [vmem:[%s1699_s3 + $0x14] ss:$8 sps:$4 sm:$0xff]   ;;  %v1163_v13 = vld [vmem:[%s1699_s3 + $0x10] ss:$8 sps:$4 sm:$0xff]  }
   0x4   :  { %112 = vmatprep.subr.bf16.mxu1 %v1149_v3  ;;  %v35_v8 = vpack.c.bf16 %v34_v5, %v34_v5  ;;  %v1158_v9 = vld [vmem:[%s1699_s3 + $0x4] ss:$8 sps:$4 sm:$0xff]   ;;  %v1160_v10 = vld [vmem:[%s1699_s3] ss:$8 sps:$4 sm:$0xff]   ;;  %v1167_v17 = vld [vmem:[%s1699_s3 + $0x34] ss:$8 sps:$4 sm:$0xff]  }
   0x5   :  { %v1157_v12 = vld [vmem:[%s1697_s1 + $0x2c] ss:$16 sps:$4 sm:$0xff]   ;;  %596 = vmatprep.subr.bf16.mxu0 %v1158_v9  ;;  %v1155_v15 = vld [vmem:[%s1697_s1 + $0x28] ss:$16 sps:$4 sm:$0xff]  }
   0x6   :  { %597 = vmatpush1.bf16.msra.mxu0 %v1160_v10  ;;  %v1164_v14 = vld [vmem:[%s1699_s3 + $0x24] ss:$8 sps:$4 sm:$0xff]   ;;  %v1166_v16 = vld [vmem:[%s1699_s3 + $0x20] ss:$8 sps:$4 sm:$0xff]   ;;  %v1169_v18 = vld [vmem:[%s1699_s3 + $0x30] ss:$8 sps:$4 sm:$0xff]  }
   0x7   :  { %113 = vmatpush1.bf16.msra.mxu1 %v1151_v4  ;;  %598 = vmatprep.subr.bf16.mxu0 %v1161_v11  ;;  %v1170_v19 = vld [vmem:[%s1699_s3 + $0x44] ss:$8 sps:$4 sm:$0xff]   ;;  %v1172_v20 = vld [vmem:[%s1699_s3 + $0x40] ss:$8 sps:$4 sm:$0xff]   ;;  %v1173_v21 = vld [vmem:[%s1699_s3 + $0x54] ss:$8 sps:$4 sm:$0xff]  }
   0x8   :  { %151 = vmatprep.subr.bf16.mxu1 %v1154_v6  ;;  %v1175_v22 = vld [vmem:[%s1699_s3 + $0x50] ss:$8 sps:$4 sm:$0xff]   ;;  %v1176_v23 = vld [vmem:[%s1699_s3 + $0x64] ss:$8 sps:$4 sm:$0xff]   ;;  %v1178_v24 = vld [vmem:[%s1699_s3 + $0x60] ss:$8 sps:$4 sm:$0xff]  }
   0x9   :  { %v1179_v25 = vld [vmem:[%s1699_s3 + $0x74] ss:$8 sps:$4 sm:$0xff]   ;;  %v1181_v26 = vld [vmem:[%s1699_s3 + $0x70] ss:$8 sps:$4 sm:$0xff]   ;;  %v1182_v27 = vld [vmem:[%s1699_s3 + $0x84] ss:$8 sps:$4 sm:$0xff]  }
   0xa   :  { %993 = vmatmul.mubr.msk.bf16.vlgmr.msra.gmra.mrb[0].mxu1 %vm106_vm0, %v35_v8  ;;  %599 = vmatpush1.bf16.msra.mxu0 %v1163_v13  ;;  %v1184_v28 = vld [vmem:[%s1699_s3 + $0x80] ss:$8 sps:$4 sm:$0xff]   ;;  %v1185_v29 = vld [vmem:[%s1699_s3 + $0x94] ss:$8 sps:$4 sm:$0xff]   ;;  %v1187_v30 = vld [vmem:[%s1699_s3 + $0x90] ss:$8 sps:$4 sm:$0xff]  }
   0xb   :  { %152 = vmatpush1.bf16.msra.mxu1 %v1152_v7  ;;  %183 = vmatprep.mubr.bf16.mxu1 %v1302_v2  ;;  %v1188_v31 = vld [vmem:[%s1699_s3 + $0xa4] ss:$8 sps:$4 sm:$0xff]   ;;  %v1190_v32 = vld [vmem:[%s1699_s3 + $0xa0] ss:$8 sps:$4 sm:$0xff]   ;;  %v1191_v33 = vld [vmem:[%s1699_s3 + $0xb4] ss:$8 sps:$4 sm:$0xff]  }
   0xc   :  { %153 = vmatprep.subr.bf16.mxu1 %v1157_v12  ;;  %600 = vmatprep.subr.bf16.mxu0 %v1164_v14  ;;  %v1193_v34 = vld [vmem:[%s1699_s3 + $0xb0] ss:$8 sps:$4 sm:$0xff]   ;;  %v1194_v35 = vld [vmem:[%s1699_s3 + $0xc4] ss:$8 sps:$4 sm:$0xff]  }
   0xe   :  { %601 = vmatpush1.bf16.msra.mxu0 %v1166_v16 }
   0xf   :  { %154 = vmatpush1.bf16.msra.mxu1 %v1155_v15  ;;  %602 = vmatprep.subr.bf16.mxu0 %v1167_v17 }
  0x12   :  { %994 = vmatmul.mubr.msk.bf16.vlgmr.msra.gmra.mrb[4].mxu1 %vm106_vm0, %v35_v8  ;;  %603 = vmatpush1.bf16.msra.mxu0 %v1169_v18 }
  0x13   :  { %604 = vmatprep.subr.bf16.mxu0 %v1170_v19 }
  0x16   :  { %605 = vmatpush1.bf16.msra.mxu0 %v1172_v20 }
  0x17   :  { %606 = vmatprep.subr.bf16.mxu0 %v1173_v21 }
  0x1a   :  { %607 = vmatpush1.bf16.msra.mxu0 %v1175_v22 }
  0x1b   :  { %608 = vmatprep.subr.bf16.mxu0 %v1176_v23 }
  0x1e   :  { %609 = vmatpush1.bf16.msra.mxu0 %v1178_v24 }
  0x1f   :  { %610 = vmatprep.subr.bf16.mxu0 %v1179_v25 }
  0x22   :  { %611 = vmatpush1.bf16.msra.mxu0 %v1181_v26 }
  0x23   :  { %612 = vmatprep.subr.bf16.mxu0 %v1182_v27 }
  0x26   :  { %613 = vmatpush1.bf16.msra.mxu0 %v1184_v28 }
  0x27   :  { %614 = vmatprep.subr.bf16.mxu0 %v1185_v29 }
  0x2a   :  { %615 = vmatpush1.bf16.msra.mxu0 %v1187_v30 }
  0x2b   :  { %616 = vmatprep.subr.bf16.mxu0 %v1188_v31 }
  0x2e   :  { %617 = vmatpush1.bf16.msra.mxu0 %v1190_v32 }
  0x2f   :  { %618 = vmatprep.subr.bf16.mxu0 %v1191_v33 }
  0x30   :  { %14 = vsyncpa [#allocation3], 0  ;;  %v1196_v36 = vld [vmem:[%s1699_s3 + $0xc0] ss:$8 sps:$4 sm:$0xff]   ;;  %v1197_v37 = vld [vmem:[%s1699_s3 + $0xd4] ss:$8 sps:$4 sm:$0xff]   ;;  %v46_v56 = vlaneseq }
  0x31   :  { %v1199_v38 = vld [vmem:[%s1699_s3 + $0xd0] ss:$8 sps:$4 sm:$0xff]   ;;  %v1200_v39 = vld [vmem:[%s1699_s3 + $0xe4] ss:$8 sps:$4 sm:$0xff]   ;;  %v1202_v40 = vld [vmem:[%s1699_s3 + $0xe0] ss:$8 sps:$4 sm:$0xff]  }
  0x32   :  { %619 = vmatpush1.bf16.msra.mxu0 %v1193_v34  ;;  %v1203_v41 = vld [vmem:[%s1699_s3 + $0xf4] ss:$8 sps:$4 sm:$0xff]   ;;  %v1205_v42 = vld [vmem:[%s1699_s3 + $0xf0] ss:$8 sps:$4 sm:$0xff]   ;;  %v1208_v43 = vld [vmem:[%s1699_s3 + $0x104] ss:$8 sps:$4 sm:$0xff]  }
  0x33   :  { %620 = vmatprep.subr.bf16.mxu0 %v1194_v35  ;;  %v1254_v44 = vld [vmem:[%s1701_s5 + $0x40] sm:$0xff]   ;;  %v1256_v46 = vld [vmem:[%s1701_s5 + $0x48] sm:$0xff]   ;;  %v1258_v48 = vld [vmem:[%s1701_s5 + $0x50] sm:$0xff]   ;;  %v1520_v57 = vshrl.u32 %v46_v56, 7  ;;  %vm1304_vm1 = vmmov 0  }
  0x34   :  { %v1255_v45 = vld [vmem:[%s1701_s5] sm:$0xff]   ;;  %1085 = vmatprep.subr.bf16.mxu1 %v1254_v44  ;;  %v1257_v47 = vld [vmem:[%s1701_s5 + $0x8] sm:$0xff]   ;;  %v1259_v49 = vld [vmem:[%s1701_s5 + $0x10] sm:$0xff]  }
  0x35   :  { %1086 = vmatpush3.bf16.msra.mxu1 %v1255_v45  ;;  %v1260_v50 = vld [vmem:[%s1701_s5 + $0x58] sm:$0xff]   ;;  %v1262_v52 = vld [vmem:[%s1701_s5 + $0x60] sm:$0xff]   ;;  %v1264_v54 = vld [vmem:[%s1701_s5 + $0x68] sm:$0xff]   ;;  %v48_v58 = vsub.s32 0, %v1520_v57  ;;  %v52_v60 = vsub.s32 1, %v1520_v57  ;;  %v60_v4 = vsub.s32 3, %v1520_v57 }
  0x36   :  { %621 = vmatpush1.bf16.msra.mxu0 %v1196_v36  ;;  %1087 = vmatprep.subr.bf16.mxu1 %v1256_v46  ;;  %v1261_v51 = vld [vmem:[%s1701_s5 + $0x18] sm:$0xff]   ;;  %v1263_v53 = vld [vmem:[%s1701_s5 + $0x20] sm:$0xff]   ;;  %v1265_v55 = vld [vmem:[%s1701_s5 + $0x28] sm:$0xff]  }
  0x37   :  { %622 = vmatprep.subr.bf16.mxu0 %v1197_v37  ;;  %v1526_v59 = vld [vmem:[%s1698_s2] sm:$0xf]  ;;  %v1211_v12 = vld [vmem:[%s1699_s3 + $0x114] ss:$8 sps:$4 sm:$0xff]   ;;  %v1209_v15 = vld [vmem:[%s1699_s3 + $0x110] ss:$8 sps:$4 sm:$0xff]  }
  0x38   :  { %v49_v61 = vrot.slane %v1526_v59, %v48_v58  ;;  %v53_v62 = vrot.slane %v1526_v59, %v52_v60  ;;  %v1206_v9 = vld [vmem:[%s1699_s3 + $0x100] ss:$8 sps:$4 sm:$0xff]   ;;  %v61_v10 = vrot.slane %v1526_v59, %v60_v4  ;;  %v1214_v18 = vld [vmem:[%s1699_s3 + $0x124] ss:$8 sps:$4 sm:$0xff]   ;;  %v1217_v23 = vld [vmem:[%s1699_s3 + $0x134] ss:$8 sps:$4 sm:$0xff]  }
  0x39   :  { %1088 = vmatpush3.bf16.msra.mxu1 %v1257_v47  ;;  %v1212_v21 = vld [vmem:[%s1699_s3 + $0x120] ss:$8 sps:$4 sm:$0xff]   ;;  %v1215_v24 = vld [vmem:[%s1699_s3 + $0x130] ss:$8 sps:$4 sm:$0xff]   ;;  %v1220_v25 = vld [vmem:[%s1699_s3 + $0x144] ss:$8 sps:$4 sm:$0xff]  }
  0x3a   :  { %623 = vmatpush1.bf16.msra.mxu0 %v1199_v38  ;;  %1089 = vmatprep.subr.bf16.mxu1 %v1258_v48  ;;  %v1218_v26 = vld [vmem:[%s1699_s3 + $0x140] ss:$8 sps:$4 sm:$0xff]   ;;  %v1223_v27 = vld [vmem:[%s1699_s3 + $0x154] ss:$8 sps:$4 sm:$0xff]   ;;  %v1221_v28 = vld [vmem:[%s1699_s3 + $0x150] ss:$8 sps:$4 sm:$0xff]  }
  0x3b   :  { %624 = vmatprep.subr.bf16.mxu0 %v1200_v39  ;;  %v1226_v29 = vld [vmem:[%s1699_s3 + $0x164] ss:$8 sps:$4 sm:$0xff]   ;;  %v1224_v30 = vld [vmem:[%s1699_s3 + $0x160] ss:$8 sps:$4 sm:$0xff]   ;;  %v1229_v31 = vld [vmem:[%s1699_s3 + $0x174] ss:$8 sps:$4 sm:$0xff]  }
  0x3c   :  { %v1227_v32 = vld [vmem:[%s1699_s3 + $0x170] ss:$8 sps:$4 sm:$0xff]   ;;  %v1232_v33 = vld [vmem:[%s1699_s3 + $0x184] ss:$8 sps:$4 sm:$0xff]   ;;  %v1230_v34 = vld [vmem:[%s1699_s3 + $0x180] ss:$8 sps:$4 sm:$0xff]  }
  0x3d   :  { %1090 = vmatpush3.bf16.msra.mxu1 %v1259_v49  ;;  %v1235_v35 = vld [vmem:[%s1699_s3 + $0x194] ss:$8 sps:$4 sm:$0xff]   ;;  %v1233_v36 = vld [vmem:[%s1699_s3 + $0x190] ss:$8 sps:$4 sm:$0xff]   ;;  %v1238_v37 = vld [vmem:[%s1699_s3 + $0x1a4] ss:$8 sps:$4 sm:$0xff]  }
  0x3e   :  { %625 = vmatpush1.bf16.msra.mxu0 %v1202_v40  ;;  %1091 = vmatprep.subr.bf16.mxu1 %v1260_v50  ;;  %v1236_v38 = vld [vmem:[%s1699_s3 + $0x1a0] ss:$8 sps:$4 sm:$0xff]   ;;  %v1241_v39 = vld [vmem:[%s1699_s3 + $0x1b4] ss:$8 sps:$4 sm:$0xff]   ;;  %v1239_v40 = vld [vmem:[%s1699_s3 + $0x1b0] ss:$8 sps:$4 sm:$0xff]  }
  0x3f   :  { %626 = vmatprep.subr.bf16.mxu0 %v1203_v41  ;;  %v1244_v41 = vld [vmem:[%s1699_s3 + $0x1c4] ss:$8 sps:$4 sm:$0xff]   ;;  %v1247_v44 = vld [vmem:[%s1699_s3 + $0x1d4] ss:$8 sps:$4 sm:$0xff]   ;;  %v1245_v45 = vld [vmem:[%s1699_s3 + $0x1d0] ss:$8 sps:$4 sm:$0xff]  }
  0x40   :  { %v1250_v47 = vld [vmem:[%s1699_s3 + $0x1e4] ss:$8 sps:$4 sm:$0xff]   ;;  %v1248_v48 = vld [vmem:[%s1699_s3 + $0x1e0] ss:$8 sps:$4 sm:$0xff]   ;;  %v1253_v50 = vld [vmem:[%s1699_s3 + $0x1f4] ss:$8 sps:$4 sm:$0xff]  }
  0x41   :  { %1092 = vmatpush3.bf16.msra.mxu1 %v1261_v51  ;;  %v1251_v51 = vld [vmem:[%s1699_s3 + $0x1f0] ss:$8 sps:$4 sm:$0xff]  }
  0x42   :  { %627 = vmatpush1.bf16.msra.mxu0 %v1205_v42  ;;  %1093 = vmatprep.subr.bf16.mxu1 %v1262_v52  ;;  %v1242_v42 = vld [vmem:[%s1699_s3 + $0x1c0] ss:$8 sps:$4 sm:$0xff]   ;;  %v1268_v56 = vld [vmem:[%s1701_s5 + $0x78] sm:$0xff]  }
  0x43   :  { %637 = vmatprep.subr.bf16.mxu0 %v1208_v43  ;;  %v56_v43 = vsub.s32 2, %v1520_v57  ;;  %v1271_v57 = vld [vmem:[%s1703_s7 + $0x8] sm:$0xff]  }
  0x45   :  { %1094 = vmatpush3.bf16.msra.mxu1 %v1263_v53  ;;  %v57_v46 = vrot.slane %v1526_v59, %v56_v43  ;;  %v1269_v59 = vld [vmem:[%s1701_s5 + $0x38] sm:$0xff]  }
  0x46   :  { %1095 = vmatprep.subr.bf16.mxu1 %v1264_v54  ;;  %v1266_v54 = vld [vmem:[%s1701_s5 + $0x70] sm:$0xff]  }
  0x49   :  { %1096 = vmatpush3.bf16.msra.mxu1 %v1265_v55  ;;  %v1267_v55 = vld [vmem:[%s1701_s5 + $0x30] sm:$0xff]  }
  0x4a   :  { %1097 = vmatprep.subr.bf16.mxu1 %v1266_v54 }
  0x4d   :  { %1098 = vmatpush3.bf16.msra.mxu1 %v1267_v55 }
  0x4e   :  { %1099 = vmatprep.subr.bf16.mxu1 %v1268_v56 }
  0x51   :  { %1100 = vmatpush3.bf16.msra.mxu1 %v1269_v59 }
  0xdd   :  { %v144_v63 = vpop.f32.mrb[0].mxu1 }
  0xde   :  { %v145_v0 = vadd.f32 %v144_v63, %v49_v61  ;;  %v146_v1 = vpop.f32.mrb[1].mxu1  ;;  %v1303_v61 = vmov 0.0  }
  0xdf   :  { %v147_v2 = vadd.f32 %v146_v1, %v53_v62  ;;  %v148_v3 = vpop.f32.mrb[2].mxu1  ;;  %1116 = vmatprep.subr.bf16.mxu1 %v1303_v61  ;;  %v264_v62 = vld [vmem:[%s1700_s4] sm:$0x3] }
  0xe0   :  { %v192_v5 = vmax.f32 %v145_v0, 0.0  ;;  %v149_v6 = vpop.f32.mrb[3].mxu1  ;;  %v269_v63 = vrot.slane %v264_v62, %v48_v58  ;;  %v273_v0 = vrot.slane %v264_v62, %v52_v60  ;;  %v1272_v58 = vld [vmem:[%s1703_s7 + $0x10] sm:$0xff]   ;;  %v1273_v60 = vld [vmem:[%s1703_s7 + $0x18] sm:$0xff]  }
  0xe1   :  { %v193_v7 = vmax.f32 %v147_v2, 0.0 }
  0xe2   :  { %v196_v11 = vpack.c.bf16 %v192_v5, %v192_v5 }
  0xe3   :  { %v197_v8 = vpack.c.bf16 %v193_v7, %v193_v7 }
  0xe5   :  { %628 = vmatprep.mubr.bf16.mxu0 %v197_v8  ;;  %v1543_v13 = vpop.f32.mrb[4].mxu1 }
  0xe6   :  { %629 = vmatmul.mubr.bf16.vlgmr.msra.gmra.mrb[0].mxu0 %v196_v11  ;;  %v187_v14 = vpop.f32.mrb[5].mxu1  ;;  %v186_v49 = vadd.f32 %v1543_v13, %v57_v46  ;;  %v1275_v13 = vld [vmem:[%s1703_s7 + $0x28] sm:$0xff]  }
  0xe7   :  { %638 = vmatpush1.bf16.msra.mxu0 %v1206_v9  ;;  %v188_v16 = vadd.f32 %v187_v14, %v61_v10  ;;  %v189_v17 = vpop.f32.mrb[6].mxu1  ;;  %v1270_v10 = vld [vmem:[%s1703_s7] sm:$0xff]   ;;  %v1276_v14 = vld [vmem:[%s1703_s7 + $0x30] sm:$0xff]  }
  0xe8   :  { %639 = vmatprep.subr.bf16.mxu0 %v1211_v12  ;;  %v190_v19 = vpop.f32.mrb[7].mxu1  ;;  %v194_v52 = vmax.f32 %v186_v49, 0.0  ;;  %v1274_v12 = vld [vmem:[%s1703_s7 + $0x20] sm:$0xff]  }
  0xe9   :  { %v195_v20 = vmax.f32 %v188_v16, 0.0  ;;  %v1059_v17 = vld [vmem:[%s1702_s6] ss:$0 sm:$0xff] }
  0xea   :  { %v198_v53 = vpack.c.bf16 %v194_v52, %v194_v52 }
  0xeb   :  { %640 = vmatpush1.bf16.msra.mxu0 %v1209_v15  ;;  %v199_v22 = vpack.c.bf16 %v195_v20, %v195_v20  ;;  %v1277_v15 = vld [vmem:[%s1703_s7 + $0x38] sm:$0xff]   ;;  %s1305_s7 = smov [#allocation2]  }
  0xec   :  { %641 = vmatprep.subr.bf16.mxu0 %v1214_v18  ;;  %s977_s1 = sshll.u32 %s1305_s7, 4  ;;  %s978_s1 = int_to_ptr.vmem [resolvable:$true] %s977_s1 }
  0xed   :  { %669 = vmatprep.mubr.bf16.mxu0 %v199_v22  ;;  %s1278_s6 = scalar_lea.vmem %s978_s1, 128  ;;  %p1283_p1 = scmp.lt.s32.totalorder %s978_s1, %s978_s1 }
  0xee   :  { %p1279_p0 = scmp.ne.s32.totalorder %s978_s1, %s1278_s6  ;;  %p1284_p2 = scmp.lt.s32.totalorder %s1278_s6, %s1278_s6 }
  0xef   :  { %642 = vmatpush1.bf16.msra.mxu0 %v1212_v21 }
  0xf0   :  { %643 = vmatprep.subr.bf16.mxu0 %v1217_v23  ;;  %p1285_p3 = por %p1284_p2, %p1283_p1 }
  0xf2   :  { %p1286_p4 = pnand %p1285_p3, %p1279_p0 }
  0xf3   :  { %644 = vmatpush1.bf16.msra.mxu0 %v1215_v24 }
  0xf4   :  { %645 = vmatprep.subr.bf16.mxu0 %v1220_v25  ;;  %v1076_v25 = vld [vmem:[%s1704_s8] ss:$0 sm:$0xff] }
  0xf7   :  { %646 = vmatpush1.bf16.msra.mxu0 %v1218_v26 }
  0xf8   :  { %647 = vmatprep.subr.bf16.mxu0 %v1223_v27 }
  0xfb   :  { %648 = vmatpush1.bf16.msra.mxu0 %v1221_v28 }
  0xfc   :  { %649 = vmatprep.subr.bf16.mxu0 %v1226_v29 }
  0xff   :  { %650 = vmatpush1.bf16.msra.mxu0 %v1224_v30 }
 0x100   :  { %651 = vmatprep.subr.bf16.mxu0 %v1229_v31 }
 0x103   :  { %652 = vmatpush1.bf16.msra.mxu0 %v1227_v32 }
 0x104   :  { %653 = vmatprep.subr.bf16.mxu0 %v1232_v33 }
 0x107   :  { %654 = vmatpush1.bf16.msra.mxu0 %v1230_v34 }
 0x108   :  { %655 = vmatprep.subr.bf16.mxu0 %v1235_v35 }
 0x10b   :  { %656 = vmatpush1.bf16.msra.mxu0 %v1233_v36 }
 0x10c   :  { %657 = vmatprep.subr.bf16.mxu0 %v1238_v37 }
 0x10f   :  { %658 = vmatpush1.bf16.msra.mxu0 %v1236_v38 }
 0x110   :  { %659 = vmatprep.subr.bf16.mxu0 %v1241_v39 }
 0x113   :  { %660 = vmatpush1.bf16.msra.mxu0 %v1239_v40 }
 0x114   :  { %661 = vmatprep.subr.bf16.mxu0 %v1244_v41 }
 0x117   :  { %662 = vmatpush1.bf16.msra.mxu0 %v1242_v42 }
 0x118   :  { %663 = vmatprep.subr.bf16.mxu0 %v1247_v44 }
 0x11b   :  { %664 = vmatpush1.bf16.msra.mxu0 %v1245_v45 }
 0x11c   :  { %665 = vmatprep.subr.bf16.mxu0 %v1250_v47 }
 0x11f   :  { %666 = vmatpush1.bf16.msra.mxu0 %v1248_v48 }
 0x120   :  { %667 = vmatprep.subr.bf16.mxu0 %v1253_v50 }
 0x123   :  { %668 = vmatpush1.bf16.msra.mxu0 %v1251_v51 }
 0x126   :  { %670 = vmatmul.mubr.bf16.vlgmr.msra.gmra.mrb[0].mxu0 %v198_v53 }
 0x1f9   :  { %v671_v1 = vpop.f32.mrb[0].mxu0 }
 0x1fa   :  { %v1136_v2 = vadd.f32 %v671_v1, %v269_v63  ;;  %v673_v3 = vpop.f32.mrb[1].mxu0 }
 0x1fb   :  { %v1137_v4 = vadd.f32 %v673_v3, %v273_v0  ;;  %v675_v5 = vpop.f32.mrb[2].mxu0 }
 0x1fc   :  { %v678_v6 = vmax.f32 %v1136_v2, 0.0  ;;  %v676_v7 = vpop.f32.mrb[3].mxu0 }
 0x1fd   :  { %v679_v8 = vmax.f32 %v1137_v4, 0.0 }
 0x1fe   :  { %v680_v11 = vpack.c.bf16 %v678_v6, %v678_v6 }
 0x1ff   :  { %v681_v9 = vpack.c.bf16 %v679_v8, %v679_v8 }
 0x201   :  { %849 = vmatprep.mubr.bf16.mxu1 %v681_v9 }
 0x202   :  { %850 = vmatmul.mubr.bf16.vlgmr.msra.gmra.mrb[8].mxu1 %v680_v11 }
 0x203   :  { %1117 = vmatpush3.bf16.msra.mxu1 %v1270_v10  ;;  %1132 = vmatprep.mubr.msk.bf16.mxu1 %vm1304_vm1, %v1303_v61 }
 0x204   :  { %1118 = vmatprep.subr.bf16.mxu1 %v1303_v61 }
 0x207   :  { %1119 = vmatpush3.bf16.msra.mxu1 %v1271_v57 }
 0x208   :  { %1120 = vmatprep.subr.bf16.mxu1 %v1303_v61 }
 0x20b   :  { %1121 = vmatpush3.bf16.msra.mxu1 %v1272_v58 }
 0x20c   :  { %1122 = vmatprep.subr.bf16.mxu1 %v1303_v61 }
 0x20f   :  { %1123 = vmatpush3.bf16.msra.mxu1 %v1273_v60 }
 0x210   :  { %1124 = vmatprep.subr.bf16.mxu1 %v1303_v61 }
 0x213   :  { %1125 = vmatpush3.bf16.msra.mxu1 %v1274_v12 }
 0x214   :  { %1126 = vmatprep.subr.bf16.mxu1 %v1303_v61 }
 0x217   :  { %1127 = vmatpush3.bf16.msra.mxu1 %v1275_v13 }
 0x218   :  { %1128 = vmatprep.subr.bf16.mxu1 %v1303_v61 }
 0x21b   :  { %1129 = vmatpush3.bf16.msra.mxu1 %v1276_v14 }
 0x21c   :  { %1130 = vmatprep.subr.bf16.mxu1 %v1303_v61 }
 0x21f   :  { %1131 = vmatpush3.bf16.msra.mxu1 %v1277_v15 }
 0x2d5   :  { %v1101_v16 = vpop.f32.mrb[8].mxu1 }
 0x2d6   :  { %v1102_v18 = vpop.f32.mrb[9].mxu1 }
 0x2d7   :  { %v1103_v19 = vadd.f32 %v1102_v18, %v1101_v16  ;;  %v1104_v20 = vpop.f32.mrb[10].mxu1 }
 0x2d8   :  { %v1105_v21 = vpop.f32.mrb[11].mxu1 }
 0x2d9   :  { %v852_v22 = vadd.f32 %v1103_v19, %v1059_v17 }
 0x2db   :  { %v857_v23 = vmax.f32 %v852_v22, 0.0 }
 0x2dd   :  { %v858_v24 = vpack.c.bf16 %v857_v23, %v857_v23 }
 0x2df   :  { %1133 = vmatmul.mubr.bf16.vlgmr.msra.gmra.mrb[12].mxu1 %v858_v24 }
 0x3b2   :  { %v964_v26 = vpop.f32.mrb[12].mxu1 }
 0x3b3   :  { %v965_v27 = vadd.f32 %v1076_v25, %v964_v26  ;;  %v1134_v28 = vpop.f32.mrb[13].mxu1 }
 0x3b4   :  { %v967_v29 = vpop.f32.mrb[14].mxu1 }
 0x3b5   :  { %970 = vst [vmem:[#allocation2] sm:$0xff] %v965_v27  ;;  %v1135_v30 = vpop.f32.mrb[15].mxu1 }
 0x3b6   :  { %1289 = shalt.err (!%p1286_p4)
}
 0x3b7   :  { %s1290_s8 = scalar_lea.hbm %s1705_s9, 128 }
 0x3b8   :  { %p1291_p5 = scmp.ne.s32.totalorder %s1705_s9, %s1290_s8  ;;  %p1294_p6 = scmp.lt.u32.totalorder %s1290_s8, %s1705_s9 }
 0x3ba   :  { %p1296_p7 = pnand %p1294_p6, %p1291_p5 }
 0x3bc   :  { %1299 = shalt.err (!%p1296_p7)
}
 0x3bd   :  { %980 = dma.vmem_to_hbm [thread:$0]  %s978_s1, 128, %s1705_s9, [#allocation3]  }
 0x3be   :  { %1300 = dma.done.wait [#allocation3], 128  }
 0x3bf   :  { %1301 = vsyncadd [#allocation3], 4294967168 }
 0x3c0   :  { %984 = vsyncpa [#allocation3], 1 }

</bundles_post_ra>
